<compile_context>
chip_gen: v6e
topology: v6e:2x2x1
jax: 0.10.0
libtpu: 0.0.40
codegen_flags: <defaults>
</compile_context>

<pallas_src>
import functools

import jax
import jax.numpy as jnp
import numpy as np
from jax.experimental import pallas as pl
from jax.experimental.pallas import tpu as pltpu


def _round_up(x, m):
    return ((x + m - 1) // m) * m


def _cdiv(a, b):
    return -(-a // b)


def _lica_kernel(x_ref, w1cat_ref, b1cat_ref, w1b_ref, b1b_ref,
                 g_ref, wc2_ref, bc2_ref, q_ref, *, e_pad: int, hid: int):
    """One row-tile of the LICA mixing-critic forward pass."""
    f32 = jnp.float32
    cdt = w1cat_ref.dtype                       # MXU compute dtype (bf16 or f32)
    x = x_ref[...]                              # (TB, K+S)  [act | states]

    # ---- stage 1: one fused MXU pass over all state->X hypernet first layers
    #   lanes [0      : E_pad )  act_rep  (act replicated per mixing column, via R)
    #   lanes [E_pad  : 2E_pad)  hyper_w_1 hidden pre-activation
    #   lanes [2E_pad : end   )  small heads: b1 | hyper_w_final hid | hyper_b_2 hid
    st1 = jnp.dot(x, w1cat_ref[...], preferred_element_type=f32) + b1cat_ref[...]
    act_rep = st1[:, :e_pad]
    h1 = jnp.maximum(st1[:, e_pad:2 * e_pad], 0.0)
    small = st1[:, 2 * e_pad:]                  # (TB, SG)

    # ---- stage 2: per-sample mixing weights  w1 = relu(.) @ w1b + b1b
    w1 = jnp.dot(h1.astype(cdt), w1b_ref[...],
                 preferred_element_type=f32) + b1b_ref[...]          # (TB, E_pad)

    # ---- stage 3: torch.bmm(action_probs, w1) as a constant-selector matmul.
    #   hpre[:, j] = sum_k act[k] * w1[k*H+j] + b1[j]   for j < hid
    #   lane `hid` carries a constant 1.0 so the final reduction also adds b2.
    lane = jax.lax.broadcasted_iota(jnp.int32, small.shape, 1)
    b1_plus = jnp.where(lane < hid, small,
                        jnp.where(lane == hid, 1.0, 0.0))
    prods = (act_rep * w1).astype(cdt)
    hpre = jnp.dot(prods, g_ref[...], preferred_element_type=f32) + b1_plus
    h = jnp.maximum(hpre, 0.0)                  # (TB, SG); lane `hid` == 1.0

    # ---- stage 4: fused second layers of hyper_w_final / hyper_b_2
    #   s2 lanes [0:hid) = w_final,  lane `hid` = b2,  remaining lanes 0.
    #   (b1 lanes feed zero weight rows, so relu-ing them is harmless.)
    small_relu = jnp.maximum(small, 0.0).astype(cdt)
    s2 = jnp.dot(small_relu, wc2_ref[...], preferred_element_type=f32) + bc2_ref[...]

    # ---- stage 5: q = sum_j h_j * w_final_j + b2  (marker lane picks up b2)
    q_ref[...] = jnp.sum(h * s2, axis=-1, keepdims=True)             # (TB, 1)


class LICACriticPallas:
    """JAX/Pallas re-implementation of marlkit LICACritic (hypernet_layers=2)."""

    def __init__(self, n_actions, n_agents, state_shape, mixing_embed_dim, key,
                 compute_dtype=jnp.bfloat16):
        self.n_actions = n_actions
        self.n_agents = n_agents
        self.state_dim = int(np.prod(state_shape))
        self.hid_dim = mixing_embed_dim
        self.embed_dim = mixing_embed_dim * n_agents * n_actions
        self.compute_dtype = compute_dtype

        S, E, H = self.state_dim, self.embed_dim, self.hid_dim
        keys = jax.random.split(key, 14)

        def lin(kw, kb, fan_in, fan_out):
            # deterministic, PyTorch-Linear-style uniform init
            bound = 1.0 / np.sqrt(fan_in)
            w = jax.random.uniform(kw, (fan_in, fan_out), jnp.float32, -bound, bound)
            b = jax.random.uniform(kb, (1, fan_out), jnp.float32, -bound, bound)
            return w, b

        # hyper_w_1 : Linear(S,E) -> ReLU -> Linear(E,E)
        self.w1a, self.b1a = lin(keys[0], keys[1], S, E)
        self.w1b, self.b1b = lin(keys[2], keys[3], E, E)
        # hyper_b_1 : Linear(S,H)
        self.wb1, self.bb1 = lin(keys[4], keys[5], S, H)
        # hyper_w_final : Linear(S,H) -> ReLU -> Linear(H,H)
        self.wf1, self.bf1 = lin(keys[6], keys[7], S, H)
        self.wf2, self.bf2 = lin(keys[8], keys[9], H, H)
        # hyper_b_2 : Linear(S,H) -> ReLU -> Linear(H,1)
        self.wb2a, self.bb2a = lin(keys[10], keys[11], S, H)
        self.wb2b, self.bb2b = lin(keys[12], keys[13], H, 1)

        self._pack_params()

    # ------------------------------------------------------------------ #
    def _pack_params(self):
        S, E, H = self.state_dim, self.embed_dim, self.hid_dim
        K = self.n_agents * self.n_actions
        E_pad = _round_up(E, 128)
        SG = _round_up(3 * H, 128)          # one lane group shared by the 3 small heads
        self.E_pad, self.SG = E_pad, SG
        W1 = 2 * E_pad + SG

        def npy(a):
            return np.asarray(a, np.float32)

        # --- stage-1 weight: [act -> act_rep selector | states -> h1 | states -> heads]
        Wc1 = np.zeros((K + S, W1), np.float32)
        Bc1 = np.zeros((1, W1), np.float32)
        for k in range(K):                                  # R: act_rep[k*H+j] = act[k]
            Wc1[k, k * H:(k + 1) * H] = 1.0
        Wc1[K:, E_pad:E_pad + E] = npy(self.w1a)
        Bc1[0, E_pad:E_pad + E] = npy(self.b1a)[0]
        off = 2 * E_pad
        Wc1[K:, off + 0:off + H] = npy(self.wb1)            # b1  (no relu downstream)
        Bc1[0, off + 0:off + H] = npy(self.bb1)[0]
        Wc1[K:, off + H:off + 2 * H] = npy(self.wf1)        # hyper_w_final hidden
        Bc1[0, off + H:off + 2 * H] = npy(self.bf1)[0]
        Wc1[K:, off + 2 * H:off + 3 * H] = npy(self.wb2a)   # hyper_b_2 hidden
        Bc1[0, off + 2 * H:off + 3 * H] = npy(self.bb2a)[0]

        # --- hyper_w_1 second layer, lane-padded
        w1b = np.zeros((E_pad, E_pad), np.float32)
        w1b[:E, :E] = npy(self.w1b)
        b1b = np.zeros((1, E_pad), np.float32)
        b1b[0, :E] = npy(self.b1b)[0]

        # --- group-sum selector G: hpre[:, j] = sum_k (act_rep*w1)[:, k*H+j]
        G = np.zeros((E_pad, SG), np.float32)
        for k in range(K):
            G[k * H:(k + 1) * H, :H] = np.eye(H, dtype=np.float32)

        # --- fused second layers of hyper_w_final / hyper_b_2 (dense repack)
        Wc2 = np.zeros((SG, SG), np.float32)
        Wc2[H:2 * H, :H] = npy(self.wf2)                    # reads relu'd hf lanes
        Wc2[2 * H:3 * H, H:H + 1] = npy(self.wb2b)          # reads relu'd hb lanes
        Bc2 = np.zeros((1, SG), np.float32)
        Bc2[0, :H] = npy(self.bf2)[0]
        Bc2[0, H] = npy(self.bb2b)[0, 0]

        cd = self.compute_dtype
        # weights in compute dtype (R/G/zeros exact in bf16); biases stay f32.
        self._weights = (jnp.asarray(Wc1, cd), jnp.asarray(Bc1, jnp.float32),
                         jnp.asarray(w1b, cd), jnp.asarray(b1b, jnp.float32),
                         jnp.asarray(G, cd), jnp.asarray(Wc2, cd),
                         jnp.asarray(Bc2, jnp.float32))

    # ------------------------------------------------------------------ #
    def __call__(self, act, states):
        """act: (T, n_agents_in, n_actions), states: (bs, T, state_dim_in).
        As in the PyTorch source, bs is hard-coded to 1 (leading dims fold into T)."""
        n_agents_in = act.shape[1]
        state_dim_in = states.shape[2]

        # ReplicationPad1d equivalents (edge padding), only on shape mismatch.
        if n_agents_in != self.n_agents:
            pad_l = (self.n_agents - n_agents_in) // 2
            pad_r = self.n_agents - pad_l - n_agents_in
            act = jnp.pad(act, ((0, 0), (pad_l, pad_r), (0, 0)), mode="edge")
        if state_dim_in != self.state_dim:
            pad_l = (self.state_dim - state_dim_in) // 2
            pad_r = self.state_dim - pad_l - state_dim_in
            states = jnp.pad(states, ((0, 0), (0, 0), (pad_l, pad_r)), mode="edge")

        S = self.state_dim
        K = self.n_agents * self.n_actions
        states_flat = states.reshape(-1, S).astype(jnp.float32)
        act_flat = act.reshape(-1, K).astype(jnp.float32)
        T = states_flat.shape[0]

        # Fused [act | states] slab: one input DMA stream / one lane-padded tile.
        x = jnp.concatenate([act_flat, states_flat], axis=1)

        # Balanced row tiles; >= 2 grid steps above 256 rows so both v7x TCs work.
        cap = 256 if T <= 1024 else 512
        n_tiles = max(1, _cdiv(T, cap))
        if T > 256:
            n_tiles = max(n_tiles, 2)
        TB = _round_up(_cdiv(T, n_tiles), 16)
        T_pad = TB * n_tiles
        if T_pad != T:
            x = jnp.pad(x, ((0, T_pad - T), (0, 0)))
        x = x.astype(self.compute_dtype)

        weights = self._weights
        E_pad, SG = self.E_pad, self.SG
        width1 = 2 * E_pad + SG
        flops = 2 * T_pad * ((K + S) * width1 + E_pad * E_pad + E_pad * SG + SG * SG)
        bytes_accessed = (int(x.size) * int(x.dtype.itemsize)
                          + sum(int(w.size) * int(w.dtype.itemsize) for w in weights)
                          + T_pad * 4)

        kernel = functools.partial(_lica_kernel, e_pad=E_pad, hid=self.hid_dim)

        q_flat = pl.pallas_call(
            kernel,
            out_shape=jax.ShapeDtypeStruct((T_pad, 1), jnp.float32),
            grid_spec=pltpu.PrefetchScalarGridSpec(
                num_scalar_prefetch=0,
                grid=(n_tiles,),
                in_specs=[pl.BlockSpec((TB, K + S), lambda i: (i, 0))]
                         + [pl.BlockSpec(w.shape, lambda i: (0, 0)) for w in weights],
                out_specs=pl.BlockSpec((TB, 1), lambda i: (i, 0)),
            ),
            compiler_params=pltpu.CompilerParams(
                dimension_semantics=("parallel",)),
            cost_estimate=pl.CostEstimate(flops=flops, transcendentals=0,
                                          bytes_accessed=bytes_accessed),
        )(x, *weights)

        return q_flat[:T].reshape(1, -1, 1)

    # ------------------------------------------------------------------ #
    # pure-JAX reference (unpacked params) for verification.
    # quantize_dtype: optionally round inputs & weight matrices through that
    # dtype (compute stays f32) to isolate the kernel's intermediate casts.
    def reference(self, act, states, quantize_dtype=None):
        def qz(w):
            if quantize_dtype is None:
                return w
            return w.astype(quantize_dtype).astype(jnp.float32)

        n_agents_in = act.shape[1]
        state_dim_in = states.shape[2]
        if n_agents_in != self.n_agents:
            pad_l = (self.n_agents - n_agents_in) // 2
            pad_r = self.n_agents - pad_l - n_agents_in
            act = jnp.pad(act, ((0, 0), (pad_l, pad_r), (0, 0)), mode="edge")
        if state_dim_in != self.state_dim:
            pad_l = (self.state_dim - state_dim_in) // 2
            pad_r = self.state_dim - pad_l - state_dim_in
            states = jnp.pad(states, ((0, 0), (0, 0), (pad_l, pad_r)), mode="edge")

        K = self.n_agents * self.n_actions
        states_flat = qz(states.reshape(-1, self.state_dim).astype(jnp.float32))
        act_flat = qz(act.reshape(-1, 1, K).astype(jnp.float32))
        h1 = jax.nn.relu(states_flat @ qz(self.w1a) + self.b1a)
        w1 = (h1 @ qz(self.w1b) + self.b1b).reshape(-1, K, self.hid_dim)
        b1 = (states_flat @ qz(self.wb1) + self.bb1)[:, None, :]
        h = jax.nn.relu(jnp.einsum("bik,bkh->bih", act_flat, w1) + b1)
        hf = jax.nn.relu(states_flat @ qz(self.wf1) + self.bf1)
        wf = (hf @ qz(self.wf2) + self.bf2).reshape(-1, self.hid_dim, 1)
        h2 = jnp.einsum("bih,bho->bio", h, wf)
        hb = jax.nn.relu(states_flat @ qz(self.wb2a) + self.bb2a)
        b2 = (hb @ qz(self.wb2b) + self.bb2b).reshape(-1, 1, 1)
        return (h2 + b2).reshape(1, -1, 1)


if __name__ == "__main__":
    key = jax.random.PRNGKey(0)
    k_param, k_act, k_state, k_act2, k_state2 = jax.random.split(key, 5)

    n_actions = 4
    n_agents = 4
    state_shape = (32,)         # state_dim = 32
    mixing_embed_dim = 8        # hid_dim = 8, embed_dim = 128

    # Same key -> identical f32 parameters in both instances.
    critic_f32 = LICACriticPallas(n_actions, n_agents, state_shape,
                                  mixing_embed_dim, k_param,
                                  compute_dtype=jnp.float32)
    critic_bf16 = LICACriticPallas(n_actions, n_agents, state_shape,
                                   mixing_embed_dim, k_param,
                                   compute_dtype=jnp.bfloat16)

    cases = [
        ("small", 8, k_act, k_state),      # single grid step
        ("tiled", 600, k_act2, k_state2),  # multi-step balanced tiling + row padding
    ]
    for name, T, ka, ks in cases:
        act = jax.nn.softmax(
            jax.random.normal(ka, (T, n_agents, n_actions), jnp.float32), axis=-1)
        states = jax.random.normal(ks, (1, T, int(np.prod(state_shape))), jnp.float32)

        # exact-precision path: tight check against the f32 reference
        q32 = jax.block_until_ready(critic_f32(act, states))
        ref32 = critic_f32.reference(act, states)
        assert q32.shape == (1, T, 1)
        np.testing.assert_allclose(np.asarray(q32), np.asarray(ref32),
                                   rtol=2e-4, atol=2e-4)

        # bf16 MXU path: check against the bf16-boundary-quantized reference
        q16 = jax.block_until_ready(critic_bf16(act, states))
        ref16 = critic_bf16.reference(act, states, quantize_dtype=jnp.bfloat16)
        assert q16.shape == (1, T, 1)
        np.testing.assert_allclose(np.asarray(q16), np.asarray(ref16),
                                   rtol=2e-2, atol=2e-2)

    print("KERNEL_OK")
</pallas_src>

<mosaic_0001>
module attributes {stable_mosaic.version = 11 : i64} {
  func.func @_lica_kernel(%arg0: i32, %arg1: memref<16x48xf32, #tpu.memory_space<vmem>>, %arg2: memref<48x384xf32, #tpu.memory_space<vmem>>, %arg3: memref<1x384xf32, #tpu.memory_space<vmem>>, %arg4: memref<128x128xf32, #tpu.memory_space<vmem>>, %arg5: memref<1x128xf32, #tpu.memory_space<vmem>>, %arg6: memref<128x128xf32, #tpu.memory_space<vmem>>, %arg7: memref<128x128xf32, #tpu.memory_space<vmem>>, %arg8: memref<1x128xf32, #tpu.memory_space<vmem>>, %arg9: memref<16x1xf32, #tpu.memory_space<vmem>>) attributes {dimension_semantics = [#tpu.dimension_semantics<parallel>], iteration_bounds = array<i64: 1>, scalar_prefetch = 0 : i64, scratch_operands = 0 : i64, tpu.core_type = #tpu.core_type<tc>, window_params = [{transform_indices = @transform_0, window_bounds = array<i64: 16, 48>}, {pipeline_mode = #tpu.pipeline_mode<synchronous>, transform_indices = @transform_1, window_bounds = array<i64: 48, 384>}, {pipeline_mode = #tpu.pipeline_mode<synchronous>, transform_indices = @transform_2, window_bounds = array<i64: 1, 384>}, {pipeline_mode = #tpu.pipeline_mode<synchronous>, transform_indices = @transform_3, window_bounds = array<i64: 128, 128>}, {pipeline_mode = #tpu.pipeline_mode<synchronous>, transform_indices = @transform_4, window_bounds = array<i64: 1, 128>}, {pipeline_mode = #tpu.pipeline_mode<synchronous>, transform_indices = @transform_5, window_bounds = array<i64: 128, 128>}, {pipeline_mode = #tpu.pipeline_mode<synchronous>, transform_indices = @transform_6, window_bounds = array<i64: 128, 128>}, {pipeline_mode = #tpu.pipeline_mode<synchronous>, transform_indices = @transform_7, window_bounds = array<i64: 1, 128>}, {transform_indices = @transform_8, window_bounds = array<i64: 16, 1>}]} {
    %c0 = arith.constant 0 : index
    %c0_0 = arith.constant 0 : index
    %0 = vector.load %arg1[%c0, %c0_0] : memref<16x48xf32, #tpu.memory_space<vmem>>, vector<16x48xf32>
    %c0_1 = arith.constant 0 : index
    %c0_2 = arith.constant 0 : index
    %1 = vector.load %arg2[%c0_1, %c0_2] : memref<48x384xf32, #tpu.memory_space<vmem>>, vector<48x384xf32>
    %cst = arith.constant dense<0.000000e+00> : vector<16x384xf32>
    %2 = tpu.matmul %0, %1, %cst {dimension_numbers = #tpu.dot_dimension_numbers<[1], [0], [0], [1], [0, 0, 1, 1], [], []>} : vector<16x48xf32>, vector<48x384xf32>, vector<16x384xf32> -> vector<16x384xf32>
    %c0_3 = arith.constant 0 : index
    %c0_4 = arith.constant 0 : index
    %3 = vector.load %arg3[%c0_3, %c0_4] : memref<1x384xf32, #tpu.memory_space<vmem>>, vector<1x384xf32>
    %4 = vector.broadcast %3 : vector<1x384xf32> to vector<16x384xf32>
    %5 = arith.addf %2, %4 : vector<16x384xf32>
    %6 = vector.extract_strided_slice %5 {offsets = [0, 0], sizes = [16, 128], strides = [1, 1]} : vector<16x384xf32> to vector<16x128xf32>
    %7 = vector.extract_strided_slice %5 {offsets = [0, 128], sizes = [16, 128], strides = [1, 1]} : vector<16x384xf32> to vector<16x128xf32>
    %cst_5 = arith.constant 0.000000e+00 : f32
    %8 = vector.broadcast %cst_5 : f32 to vector<16x128xf32>
    %9 = arith.maximumf %7, %8 : vector<16x128xf32>
    %10 = vector.extract_strided_slice %5 {offsets = [0, 256], sizes = [16, 128], strides = [1, 1]} : vector<16x384xf32> to vector<16x128xf32>
    %c0_6 = arith.constant 0 : index
    %c0_7 = arith.constant 0 : index
    %11 = vector.load %arg4[%c0_6, %c0_7] : memref<128x128xf32, #tpu.memory_space<vmem>>, vector<128x128xf32>
    %cst_8 = arith.constant dense<0.000000e+00> : vector<16x128xf32>
    %12 = tpu.matmul %9, %11, %cst_8 {dimension_numbers = #tpu.dot_dimension_numbers<[1], [0], [0], [1], [0, 0, 1, 1], [], []>} : vector<16x128xf32>, vector<128x128xf32>, vector<16x128xf32> -> vector<16x128xf32>
    %c0_9 = arith.constant 0 : index
    %c0_10 = arith.constant 0 : index
    %13 = vector.load %arg5[%c0_9, %c0_10] : memref<1x128xf32, #tpu.memory_space<vmem>>, vector<1x128xf32>
    %14 = vector.broadcast %13 : vector<1x128xf32> to vector<16x128xf32>
    %15 = arith.addf %12, %14 : vector<16x128xf32>
    %16 = tpu.iota {dimensions = array<i32: 1>} : vector<16x128xi32>
    %c8_i32 = arith.constant 8 : i32
    %17 = vector.broadcast %c8_i32 : i32 to vector<16x128xi32>
    %18 = arith.cmpi slt, %16, %17 : vector<16x128xi32>
    %c8_i32_11 = arith.constant 8 : i32
    %19 = vector.broadcast %c8_i32_11 : i32 to vector<16x128xi32>
    %20 = arith.cmpi eq, %16, %19 : vector<16x128xi32>
    %cst_12 = arith.constant 1.000000e+00 : f32
    %cst_13 = arith.constant 0.000000e+00 : f32
    %21 = vector.broadcast %cst_12 : f32 to vector<16x128xf32>
    %22 = vector.broadcast %cst_13 : f32 to vector<16x128xf32>
    %23 = arith.select %20, %21, %22 : vector<16x128xi1>, vector<16x128xf32>
    %24 = arith.select %18, %10, %23 : vector<16x128xi1>, vector<16x128xf32>
    %25 = arith.mulf %6, %15 : vector<16x128xf32>
    %c0_14 = arith.constant 0 : index
    %c0_15 = arith.constant 0 : index
    %26 = vector.load %arg6[%c0_14, %c0_15] : memref<128x128xf32, #tpu.memory_space<vmem>>, vector<128x128xf32>
    %cst_16 = arith.constant dense<0.000000e+00> : vector<16x128xf32>
    %27 = tpu.matmul %25, %26, %cst_16 {dimension_numbers = #tpu.dot_dimension_numbers<[1], [0], [0], [1], [0, 0, 1, 1], [], []>} : vector<16x128xf32>, vector<128x128xf32>, vector<16x128xf32> -> vector<16x128xf32>
    %28 = arith.addf %27, %24 : vector<16x128xf32>
    %cst_17 = arith.constant 0.000000e+00 : f32
    %29 = vector.broadcast %cst_17 : f32 to vector<16x128xf32>
    %30 = arith.maximumf %28, %29 : vector<16x128xf32>
    %cst_18 = arith.constant 0.000000e+00 : f32
    %31 = vector.broadcast %cst_18 : f32 to vector<16x128xf32>
    %32 = arith.maximumf %10, %31 : vector<16x128xf32>
    %c0_19 = arith.constant 0 : index
    %c0_20 = arith.constant 0 : index
    %33 = vector.load %arg7[%c0_19, %c0_20] : memref<128x128xf32, #tpu.memory_space<vmem>>, vector<128x128xf32>
    %cst_21 = arith.constant dense<0.000000e+00> : vector<16x128xf32>
    %34 = tpu.matmul %32, %33, %cst_21 {dimension_numbers = #tpu.dot_dimension_numbers<[1], [0], [0], [1], [0, 0, 1, 1], [], []>} : vector<16x128xf32>, vector<128x128xf32>, vector<16x128xf32> -> vector<16x128xf32>
    %c0_22 = arith.constant 0 : index
    %c0_23 = arith.constant 0 : index
    %35 = vector.load %arg8[%c0_22, %c0_23] : memref<1x128xf32, #tpu.memory_space<vmem>>, vector<1x128xf32>
    %36 = vector.broadcast %35 : vector<1x128xf32> to vector<16x128xf32>
    %37 = arith.addf %34, %36 : vector<16x128xf32>
    %38 = arith.mulf %30, %37 : vector<16x128xf32>
    %cst_24 = arith.constant dense<0.000000e+00> : vector<16xf32>
    %39 = vector.multi_reduction <add>, %38, %cst_24 [1] : vector<16x128xf32> to vector<16xf32>
    %40 = vector.shape_cast %39 : vector<16xf32> to vector<16x1xf32>
    %c0_25 = arith.constant 0 : index
    %c0_26 = arith.constant 0 : index
    %41 = vector.load %arg9[%c0_25, %c0_26] : memref<16x1xf32, #tpu.memory_space<vmem>>, vector<16x1xf32>
    tpu.vector_store %arg9[%c0_25, %c0_26], %40 {strides = array<i32>} : memref<16x1xf32, #tpu.memory_space<vmem>>, vector<16x1xf32>,
    return
  }
  func.func @transform_0(%arg0: i32) -> (i32, i32) {
    %c0_i32 = arith.constant 0 : i32
    %c0_i32_0 = arith.constant 0 : i32
    return %arg0, %c0_i32 : i32, i32
  }
  func.func @transform_1(%arg0: i32) -> (i32, i32) {
    %c0_i32 = arith.constant 0 : i32
    %c0_i32_0 = arith.constant 0 : i32
    %c0_i32_1 = arith.constant 0 : i32
    return %c0_i32, %c0_i32_0 : i32, i32
  }
  func.func @transform_2(%arg0: i32) -> (i32, i32) {
    %c0_i32 = arith.constant 0 : i32
    %c0_i32_0 = arith.constant 0 : i32
    %c0_i32_1 = arith.constant 0 : i32
    return %c0_i32, %c0_i32_0 : i32, i32
  }
  func.func @transform_3(%arg0: i32) -> (i32, i32) {
    %c0_i32 = arith.constant 0 : i32
    %c0_i32_0 = arith.constant 0 : i32
    %c0_i32_1 = arith.constant 0 : i32
    return %c0_i32, %c0_i32_0 : i32, i32
  }
  func.func @transform_4(%arg0: i32) -> (i32, i32) {
    %c0_i32 = arith.constant 0 : i32
    %c0_i32_0 = arith.constant 0 : i32
    %c0_i32_1 = arith.constant 0 : i32
    return %c0_i32, %c0_i32_0 : i32, i32
  }
  func.func @transform_5(%arg0: i32) -> (i32, i32) {
    %c0_i32 = arith.constant 0 : i32
    %c0_i32_0 = arith.constant 0 : i32
    %c0_i32_1 = arith.constant 0 : i32
    return %c0_i32, %c0_i32_0 : i32, i32
  }
  func.func @transform_6(%arg0: i32) -> (i32, i32) {
    %c0_i32 = arith.constant 0 : i32
    %c0_i32_0 = arith.constant 0 : i32
    %c0_i32_1 = arith.constant 0 : i32
    return %c0_i32, %c0_i32_0 : i32, i32
  }
  func.func @transform_7(%arg0: i32) -> (i32, i32) {
    %c0_i32 = arith.constant 0 : i32
    %c0_i32_0 = arith.constant 0 : i32
    %c0_i32_1 = arith.constant 0 : i32
    return %c0_i32, %c0_i32_0 : i32, i32
  }
  func.func @transform_8(%arg0: i32) -> (i32, i32) {
    %c0_i32 = arith.constant 0 : i32
    %c0_i32_0 = arith.constant 0 : i32
    return %arg0, %c0_i32 : i32, i32
  }
}

</mosaic_0001>

<bundles_post_ra>
// kernel: tpu_custom_call.1
= control target key start
LH: loop header
LB: loop body
LE: loop exit
PB: predicated region body
PF: predicated region fallthrough
CT: control target
= control target key end

     0   :  { %13 = vsyncpa [#allocation3], 0  ;;  %s1037_s0 = inlined_call_operand.hbm [shape: f32[16,48], index: 0, kind: input, shape index: {}]   ;;  %s1038_s1 = inlined_call_operand.hbm [shape: f32[48,384], index: 1, kind: input, shape index: {}]   ;;  %s1039_s2 = inlined_call_operand.vmem [shape: f32[1,384], index: 2, kind: input, shape index: {}]   ;;  %s1040_s3 = inlined_call_operand.hbm [shape: f32[128,128], index: 3, kind: input, shape index: {}]   ;;  %s1041_s4 = inlined_call_operand.vmem [shape: f32[1,128], index: 4, kind: input, shape index: {}]   ;;  %s1042_s5 = inlined_call_operand.hbm [shape: f32[128,128], index: 5, kind: input, shape index: {}]   ;;  %s1043_s6 = inlined_call_operand.hbm [shape: f32[128,128], index: 6, kind: input, shape index: {}]   ;;  %s1044_s7 = inlined_call_operand.vmem [shape: f32[1,128], index: 7, kind: input, shape index: {}]   ;;  %s1045_s8 = inlined_call_operand.vmem [shape: f32[16,1], index: 8, kind: output, shape index: {}]  }
   0x1   :  { %14 = vsyncpa [#allocation5], 0 }
   0x2   :  { %15 = vsyncpa [#allocation8], 0  ;;  %s915_s27 = smov [#allocation4]  }
   0x3   :  { %s33_s28 = sshll.u32 %s915_s27, 4  ;;  %s34_s28 = int_to_ptr.vmem [resolvable:$true] %s33_s28 }
   0x4   :  { %s817_s29 = scalar_lea.vmem %s34_s28, 2304  ;;  %p822_p1 = scmp.lt.s32.totalorder %s34_s28, %s34_s28 }
   0x5   :  { %p818_p0 = scmp.ne.s32.totalorder %s34_s28, %s817_s29  ;;  %p823_p2 = scmp.lt.s32.totalorder %s817_s29, %s817_s29 }
   0x7   :  { %p824_p3 = por %p823_p2, %p822_p1 }
   0x9   :  { %p825_p4 = pnand %p824_p3, %p818_p0 }
   0xb   :  { %828 = shalt.err (!%p825_p4)
}
   0xc   :  { %s916_s30 = smov 384   ;;  %s917_s9 = smov 24  }
   0xd   :  { %39 = dma.hbm_to_vmem [thread:$0]  %s1038_s1, 2304, %s34_s28, [#allocation5], %s916_s30, %s916_s30, %s917_s9  }
   0xe   :  { %s918_s12 = smov [#allocation7]   ;;  %s919_s14 = smov [#allocation2]  }
   0xf   :  { %s61_s13 = sshll.u32 %s918_s12, 4  ;;  %s21_s15 = sshll.u32 %s919_s14, 4  ;;  %s62_s13 = int_to_ptr.vmem [resolvable:$true] %s61_s13  ;;  %s22_s15 = int_to_ptr.vmem [resolvable:$true] %s21_s15 }
  0x10   :  { %s837_s16 = scalar_lea.vmem %s62_s13, 2048  ;;  %p842_p6 = scmp.lt.s32.totalorder %s62_s13, %s62_s13 }
  0x11   :  { %p838_p5 = scmp.ne.s32.totalorder %s62_s13, %s837_s16  ;;  %p843_p7 = scmp.lt.s32.totalorder %s837_s16, %s837_s16 }
  0x13   :  { %p844_p8 = por %p843_p7, %p842_p6 }
  0x15   :  { %p845_p9 = pnand %p844_p8, %p838_p5 }
  0x17   :  { %848 = shalt.err (!%p845_p9)
}
  0x18   :  { %s920_s17 = smov 128   ;;  %s921_s18 = smov 8  }
  0x19   :  { %67 = dma.hbm_to_vmem [thread:$0]  %s1042_s5, 2048, %s62_s13, [#allocation8], %s920_s17, %s920_s17, %s921_s18  }
  0x1a   :  { %s857_s1 = scalar_lea.vmem %s22_s15, 256  ;;  %p862_p11 = scmp.lt.s32.totalorder %s22_s15, %s22_s15 }
  0x1b   :  { %p858_p10 = scmp.ne.s32.totalorder %s22_s15, %s857_s1  ;;  %p863_p12 = scmp.lt.s32.totalorder %s857_s1, %s857_s1 }
  0x1d   :  { %p864_p13 = por %p863_p12, %p862_p11 }
  0x1f   :  { %p865_p0 = pnand %p864_p13, %p858_p10 }
  0x21   :  { %868 = shalt.err (!%p865_p0)
}
  0x22   :  { %27 = dma.hbm_to_vmem [thread:$0]  %s1037_s0, 256, %s22_s15, [#allocation3], %s920_s17, %s920_s17, %s921_s18  }
  0x23   :  { %s922_s23 = smov [#allocation6]   ;;  %s923_s25 = smov [#allocation9]  }
  0x24   :  { %s47_s24 = sshll.u32 %s922_s23, 4  ;;  %s73_s5 = sshll.u32 %s923_s25, 4  ;;  %s48_s24 = int_to_ptr.vmem [resolvable:$true] %s47_s24  ;;  %s74_s5 = int_to_ptr.vmem [resolvable:$true] %s73_s5 }
  0x25   :  { %s877_s26 = scalar_lea.vmem %s48_s24, 2048  ;;  %p882_p2 = scmp.lt.s32.totalorder %s48_s24, %s48_s24 }
  0x26   :  { %p878_p1 = scmp.ne.s32.totalorder %s48_s24, %s877_s26  ;;  %p883_p3 = scmp.lt.s32.totalorder %s877_s26, %s877_s26 }
  0x28   :  { %p884_p4 = por %p883_p3, %p882_p2 }
  0x2a   :  { %p885_p5 = pnand %p884_p4, %p878_p1 }
  0x2c   :  { %888 = shalt.err (!%p885_p5)
}
  0x2d   :  { %53 = dma.hbm_to_vmem [thread:$0]  %s1040_s3, 2048, %s48_s24, [#allocation5], %s920_s17, %s920_s17, %s921_s18  }
  0x2e   :  { %s897_s0 = scalar_lea.vmem %s74_s5, 2048  ;;  %p902_p7 = scmp.lt.s32.totalorder %s74_s5, %s74_s5 }
  0x2f   :  { %p898_p6 = scmp.ne.s32.totalorder %s74_s5, %s897_s0  ;;  %p903_p8 = scmp.lt.s32.totalorder %s897_s0, %s897_s0 }
  0x31   :  { %p904_p9 = por %p903_p8, %p902_p7 }
  0x33   :  { %p905_p10 = pnand %p904_p9, %p898_p6 }
  0x35   :  { %908 = shalt.err (!%p905_p10)
}
  0x36   :  { %79 = dma.hbm_to_vmem [thread:$0]  %s1043_s6, 2048, %s74_s5, [#allocation8], %s920_s17, %s920_s17, %s921_s18  }
  0x37   :  { %909 = dma.done.wait [#allocation3], 256  }
  0x38   :  { %910 = vsyncadd [#allocation3], 4294967040 }
  0x39   :  { %911 = dma.done.wait [#allocation5], 4352  }
  0x3a   :  { %912 = vsyncadd [#allocation5], 4294962944 }
  0x3b   :  { %913 = dma.done.wait [#allocation8], 4096  }
  0x3c   :  { %914 = vsyncadd [#allocation8], 4294963200  ;;  %v924_v0 = vmov 0.0   ;;  %v115_v1 = vld [vmem:[#allocation4 + $0x80] sm:$0xff]  ;;  %v114_v2 = vld [vmem:[#allocation4 + $0x78] sm:$0xff]  ;;  %vm134_vm0 = vcmask 392192   ;;  %v119_v50 = vlaneseq }
  0x3d   :  { %205 = vmatprep.mubr.f32.mxu1 %v924_v0  ;;  %v112_v3 = vld [vmem:[#allocation4 + $0x68] sm:$0xff]  ;;  %161 = vmatprep.subr.mxu1 %v115_v1  ;;  %v111_v4 = vld [vmem:[#allocation4 + $0x60] sm:$0xff]  ;;  %v109_v5 = vld [vmem:[#allocation4 + $0x50] sm:$0xff]  ;;  %vm601_vm3 = vcmask 7168  }
  0x3e   :  { %162 = vmatpush1.msra.mxu1 %v114_v2  ;;  %v108_v6 = vld [vmem:[#allocation4 + $0x48] sm:$0xff]  ;;  %v106_v7 = vld [vmem:[#allocation4 + $0x38] sm:$0xff]  ;;  %v105_v9 = vld [vmem:[#allocation4 + $0x30] sm:$0xff]  ;;  %v1004_v51 = vshrl.u32 %v119_v50, 7 }
  0x3f   :  { %163 = vmatprep.subr.mxu1 %v112_v3  ;;  %v310_v8 = vld [vmem:[#allocation6 + $0x78] sm:$0xff]  ;;  %v309_v10 = vld [vmem:[#allocation6 + $0x70] sm:$0xff]  ;;  %v308_v12 = vld [vmem:[#allocation6 + $0x68] sm:$0xff] }
  0x40   :  { %164 = vmatpush1.msra.mxu1 %v111_v4  ;;  %694 = vmatprep.subr.mxu0 %v310_v8  ;;  %v103_v11 = vld [vmem:[#allocation4 + $0x20] sm:$0xff]  ;;  %v102_v13 = vld [vmem:[#allocation4 + $0x18] sm:$0xff]  ;;  %v100_v14 = vld [vmem:[#allocation4 + $0x8] sm:$0xff]  ;;  %v125_v52 = vsub.s32 1, %v1004_v51 }
  0x41   :  { %165 = vmatprep.subr.mxu1 %v109_v5  ;;  %695 = vmatpush3.msra.mxu0 %v310_v8  ;;  %v307_v15 = vld [vmem:[#allocation6 + $0x60] sm:$0xff]  ;;  %v99_v16 = vld [vmem:[#allocation4] sm:$0xff]  ;;  %v306_v18 = vld [vmem:[#allocation6 + $0x58] sm:$0xff] }
  0x42   :  { %166 = vmatpush1.msra.mxu1 %v108_v6  ;;  %696 = vmatprep.subr.mxu0 %v309_v10  ;;  %v97_v17 = vld [vmem:[#allocation2] sm:$0xff]  ;;  %v305_v19 = vld [vmem:[#allocation6 + $0x50] sm:$0xff]  ;;  %v116_v20 = vld [vmem:[#allocation4 + $0x88] sm:$0xff] }
  0x43   :  { %167 = vmatprep.subr.mxu1 %v106_v7  ;;  %697 = vmatpush3.msra.mxu0 %v309_v10  ;;  %v98_v21 = vld [vmem:[#allocation2 + $0x8] sm:$0xff]  ;;  %v113_v23 = vld [vmem:[#allocation4 + $0x70] sm:$0xff]  ;;  %v302_v25 = vld [vmem:[#allocation6 + $0x38] sm:$0xff] }
  0x44   :  { %168 = vmatpush1.msra.mxu1 %v105_v9  ;;  %698 = vmatprep.subr.mxu0 %v308_v12  ;;  %v304_v22 = vld [vmem:[#allocation6 + $0x48] sm:$0xff]  ;;  %v303_v24 = vld [vmem:[#allocation6 + $0x40] sm:$0xff]  ;;  %v301_v26 = vld [vmem:[#allocation6 + $0x30] sm:$0xff] }
  0x45   :  { %169 = vmatprep.subr.mxu1 %v103_v11  ;;  %699 = vmatpush3.msra.mxu0 %v308_v12  ;;  %v300_v27 = vld [vmem:[#allocation6 + $0x28] sm:$0xff]  ;;  %v299_v29 = vld [vmem:[#allocation6 + $0x20] sm:$0xff]  ;;  %v107_v30 = vld [vmem:[#allocation4 + $0x40] sm:$0xff] }
  0x46   :  { %170 = vmatpush1.msra.mxu1 %v102_v13  ;;  %700 = vmatprep.subr.mxu0 %v307_v15  ;;  %v110_v28 = vld [vmem:[#allocation4 + $0x58] sm:$0xff]  ;;  %v298_v31 = vld [vmem:[#allocation6 + $0x18] sm:$0xff]  ;;  %v297_v33 = vld [vmem:[#allocation6 + $0x10] sm:$0xff]  ;;  %v129_v13 = vsub.s32 2, %v1004_v51 }
  0x47   :  { %171 = vmatprep.subr.mxu1 %v100_v14  ;;  %701 = vmatpush3.msra.mxu0 %v307_v15  ;;  %v104_v32 = vld [vmem:[#allocation4 + $0x28] sm:$0xff]  ;;  %v101_v34 = vld [vmem:[#allocation4 + $0x10] sm:$0xff]  ;;  %v296_v35 = vld [vmem:[#allocation6 + $0x8] sm:$0xff] }
  0x48   :  { %172 = vmatpush1.msra.mxu1 %v99_v16  ;;  %702 = vmatprep.subr.mxu0 %v306_v18  ;;  %v295_v36 = vld [vmem:[#allocation6] sm:$0xff]  ;;  %v512_v37 = vld [vmem:[#allocation9 + $0x78] sm:$0xff]  ;;  %v416_v39 = vld [vmem:[#allocation7 + $0x70] sm:$0xff] }
  0x49   :  { %611 = vmatmul.mubr.msk.f32.vlgmr.msra.gmra.mxu1 %vm134_vm0, %v97_v17  ;;  %703 = vmatpush3.msra.mxu0 %v306_v18  ;;  %v417_v38 = vld [vmem:[#allocation7 + $0x78] sm:$0xff]  ;;  %v415_v40 = vld [vmem:[#allocation7 + $0x68] sm:$0xff]  ;;  %v414_v41 = vld [vmem:[#allocation7 + $0x60] sm:$0xff] }
  0x4a   :  { %211 = vmatprep.mubr.f32.mxu1 %v924_v0  ;;  %704 = vmatprep.subr.mxu0 %v305_v19  ;;  %v413_v42 = vld [vmem:[#allocation7 + $0x58] sm:$0xff]  ;;  %v412_v43 = vld [vmem:[#allocation7 + $0x50] sm:$0xff]  ;;  %v411_v44 = vld [vmem:[#allocation7 + $0x48] sm:$0xff] }
  0x4b   :  { %679 = vmatprep.subr.mxu1 %v116_v20  ;;  %705 = vmatpush3.msra.mxu0 %v305_v19  ;;  %v410_v45 = vld [vmem:[#allocation7 + $0x40] sm:$0xff]  ;;  %v409_v46 = vld [vmem:[#allocation7 + $0x38] sm:$0xff]  ;;  %v408_v47 = vld [vmem:[#allocation7 + $0x30] sm:$0xff] }
  0x4c   :  { %680 = vmatpush3.msra.mxu1 %v116_v20  ;;  %706 = vmatprep.subr.mxu0 %v304_v22  ;;  %v407_v48 = vld [vmem:[#allocation7 + $0x28] sm:$0xff]  ;;  %v406_v49 = vld [vmem:[#allocation7 + $0x20] sm:$0xff]  ;;  %v511_v63 = vld [vmem:[#allocation9 + $0x70] sm:$0xff] }
  0x4d   :  { %612 = vmatmul.mubr.msk.f32.gmra.mxu1 %vm134_vm0, %v98_v21  ;;  %707 = vmatpush3.msra.mxu0 %v304_v22  ;;  %v1010_v53 = vld [vmem:[%s1039_s2] sm:$0x7]  ;;  %v510_v1 = vld [vmem:[#allocation9 + $0x68] sm:$0xff]  ;;  %v508_v3 = vld [vmem:[#allocation9 + $0x58] sm:$0xff] }
  0x4e   :  { %681 = vmatprep.subr.mxu1 %v113_v23  ;;  %708 = vmatprep.subr.mxu0 %v303_v24  ;;  %v126_v54 = vrot.slane %v1010_v53, %v125_v52  ;;  %v509_v2 = vld [vmem:[#allocation9 + $0x60] sm:$0xff]  ;;  %v507_v4 = vld [vmem:[#allocation9 + $0x50] sm:$0xff]  ;;  %v506_v5 = vld [vmem:[#allocation9 + $0x48] sm:$0xff]  ;;  %v130_v14 = vrot.slane %v1010_v53, %v129_v13 }
  0x4f   :  { %682 = vmatpush3.msra.mxu1 %v113_v23  ;;  %709 = vmatpush3.msra.mxu0 %v303_v24  ;;  %v505_v6 = vld [vmem:[#allocation9 + $0x40] sm:$0xff]  ;;  %v504_v7 = vld [vmem:[#allocation9 + $0x38] sm:$0xff]  ;;  %v503_v8 = vld [vmem:[#allocation9 + $0x30] sm:$0xff] }
  0x50   :  { %691 = vmatprep.mubr.msk.f32.mxu1 %vm134_vm0, %v97_v17  ;;  %710 = vmatprep.subr.mxu0 %v302_v25  ;;  %v502_v9 = vld [vmem:[#allocation9 + $0x28] sm:$0xff]  ;;  %v501_v10 = vld [vmem:[#allocation9 + $0x20] sm:$0xff]  ;;  %v500_v11 = vld [vmem:[#allocation9 + $0x18] sm:$0xff] }
  0x51   :  { %711 = vmatpush3.msra.mxu0 %v302_v25  ;;  %683 = vmatprep.subr.mxu1 %v110_v28  ;;  %v499_v12 = vld [vmem:[#allocation9 + $0x10] sm:$0xff]  ;;  %v405_v18 = vld [vmem:[#allocation7 + $0x18] sm:$0xff]  ;;  %v498_v20 = vld [vmem:[#allocation9 + $0x8] sm:$0xff] }
  0x52   :  { %712 = vmatprep.subr.mxu0 %v301_v26  ;;  %684 = vmatpush3.msra.mxu1 %v110_v28  ;;  %v497_v24 = vld [vmem:[#allocation9] sm:$0xff]  ;;  %v403_v25 = vld [vmem:[#allocation7 + $0x8] sm:$0xff] }
  0x53   :  { %713 = vmatpush3.msra.mxu0 %v301_v26  ;;  %685 = vmatprep.subr.mxu1 %v107_v30  ;;  %v402_v26 = vld [vmem:[#allocation7] sm:$0xff] }
  0x54   :  { %714 = vmatprep.subr.mxu0 %v300_v27  ;;  %686 = vmatpush3.msra.mxu1 %v107_v30 }
  0x55   :  { %715 = vmatpush3.msra.mxu0 %v300_v27  ;;  %687 = vmatprep.subr.mxu1 %v104_v32  ;;  %v121_v27 = vsub.s32 0, %v1004_v51 }
  0x56   :  { %716 = vmatprep.subr.mxu0 %v299_v29  ;;  %688 = vmatpush3.msra.mxu1 %v104_v32 }
  0x57   :  { %717 = vmatpush3.msra.mxu0 %v299_v29  ;;  %689 = vmatprep.subr.mxu1 %v101_v34  ;;  %v122_v28 = vrot.slane %v1010_v53, %v121_v27  ;;  %v615_v29 = vld [vmem:[%s1041_s4] ss:$0 sm:$0xff] }
  0x58   :  { %718 = vmatprep.subr.mxu0 %v298_v31  ;;  %690 = vmatpush3.msra.mxu1 %v101_v34 }
  0x59   :  { %719 = vmatpush3.msra.mxu0 %v298_v31  ;;  %692 = vmatmul.mubr.msk.f32.vlgmr.msra.gmra.mxu1 %vm134_vm0, %v98_v21  ;;  %v404_v21 = vld [vmem:[#allocation7 + $0x10] sm:$0xff] }
  0x5a   :  { %720 = vmatprep.subr.mxu0 %v297_v33  ;;  %729 = vmatprep.subr.mxu1 %v417_v38 }
  0x5b   :  { %721 = vmatpush3.msra.mxu0 %v297_v33  ;;  %730 = vmatpush3.msra.mxu1 %v417_v38  ;;  %v394_v38 = vand.u32 127, %v119_v50 }
  0x5c   :  { %722 = vmatprep.subr.mxu0 %v296_v35  ;;  %731 = vmatprep.subr.mxu1 %v416_v39 }
  0x5d   :  { %723 = vmatpush3.msra.mxu0 %v296_v35  ;;  %732 = vmatpush3.msra.mxu1 %v416_v39  ;;  %vm396_vm1 = vcmp.eq.s32.totalorder %v394_v38, 8  ;;  %vm395_vm2 = vcmp.lt.s32.totalorder %v394_v38, 8 }
  0x5e   :  { %724 = vmatprep.subr.mxu0 %v295_v36  ;;  %733 = vmatprep.subr.mxu1 %v415_v40 }
  0x5f   :  { %725 = vmatpush3.msra.mxu0 %v295_v36  ;;  %734 = vmatpush3.msra.mxu1 %v415_v40  ;;  %v397_v40 = vsel %vm396_vm1, 1.0, %v924_v0 }
  0x60   :  { %764 = vmatprep.subr.mxu0 %v512_v37  ;;  %735 = vmatprep.subr.mxu1 %v414_v41 }
  0x61   :  { %736 = vmatpush3.msra.mxu1 %v414_v41 }
  0x62   :  { %737 = vmatprep.subr.mxu1 %v413_v42 }
  0x63   :  { %738 = vmatpush3.msra.mxu1 %v413_v42  ;;  %v616_v42 = vld [vmem:[%s1044_s7] ss:$0 sm:$0xff] }
  0x64   :  { %739 = vmatprep.subr.mxu1 %v412_v43 }
  0x65   :  { %740 = vmatpush3.msra.mxu1 %v412_v43 }
  0x66   :  { %741 = vmatprep.subr.mxu1 %v411_v44 }
  0x67   :  { %742 = vmatpush3.msra.mxu1 %v411_v44 }
  0x68   :  { %743 = vmatprep.subr.mxu1 %v410_v45 }
  0x69   :  { %744 = vmatpush3.msra.mxu1 %v410_v45 }
  0x6a   :  { %745 = vmatprep.subr.mxu1 %v409_v46 }
  0x6b   :  { %746 = vmatpush3.msra.mxu1 %v409_v46 }
  0x6c   :  { %747 = vmatprep.subr.mxu1 %v408_v47 }
  0x6d   :  { %748 = vmatpush3.msra.mxu1 %v408_v47 }
  0x6e   :  { %749 = vmatprep.subr.mxu1 %v407_v48 }
  0x6f   :  { %750 = vmatpush3.msra.mxu1 %v407_v48 }
  0x70   :  { %751 = vmatprep.subr.mxu1 %v406_v49 }
  0x71   :  { %752 = vmatpush3.msra.mxu1 %v406_v49 }
  0x72   :  { %753 = vmatprep.subr.mxu1 %v405_v18 }
  0x73   :  { %754 = vmatpush3.msra.mxu1 %v405_v18 }
  0x74   :  { %755 = vmatprep.subr.mxu1 %v404_v21 }
  0x75   :  { %756 = vmatpush3.msra.mxu1 %v404_v21 }
  0x76   :  { %757 = vmatprep.subr.mxu1 %v403_v25 }
  0x77   :  { %758 = vmatpush3.msra.mxu1 %v403_v25 }
  0x78   :  { %759 = vmatprep.subr.mxu1 %v402_v26 }
  0x79   :  { %760 = vmatpush3.msra.mxu1 %v402_v26 }
 0x109   :  { %v1013_v55 = vpop.f32.mrf.mxu1 }
 0x10a   :  { %v208_v33 = vadd.f32 %v1013_v55, %v122_v28 }
 0x10b   :  { %v209_v56 = vpop.f32.mrf.mxu1 }
 0x10c   :  { %v210_v57 = vadd.f32 %v209_v56, %v126_v54 }
 0x10d   :  { %v1015_v58 = vpop.f32.mrf.mxu1 }
 0x10e   :  { %v293_v59 = vmax.f32 %v210_v57, 0.0  ;;  %v214_v35 = vadd.f32 %v1015_v58, %v122_v28 }
 0x10f   :  { %v215_v60 = vpop.f32.mrf.mxu1 }
 0x110   :  { %v216_v61 = vadd.f32 %v215_v60, %v126_v54  ;;  %726 = vmatprep.mubr.f32.mxu0 %v293_v59 }
 0x112   :  { %v294_v62 = vmax.f32 %v216_v61, 0.0 }
 0x114   :  { %727 = vmatmul.mubr.f32.vlgmr.msra.gmra.mxu0 %v294_v62 }
 0x115   :  { %765 = vmatpush3.msra.mxu0 %v512_v37 }
 0x116   :  { %766 = vmatprep.subr.mxu0 %v511_v63 }
 0x117   :  { %767 = vmatpush3.msra.mxu0 %v511_v63 }
 0x118   :  { %768 = vmatprep.subr.mxu0 %v510_v1 }
 0x119   :  { %769 = vmatpush3.msra.mxu0 %v510_v1  ;;  %v693_v15 = vpop.f32.mrf.mxu1 }
 0x11a   :  { %770 = vmatprep.subr.mxu0 %v509_v2  ;;  %v290_v16 = vadd.f32 %v693_v15, %v130_v14 }
 0x11b   :  { %771 = vmatpush3.msra.mxu0 %v509_v2  ;;  %v284_v17 = vpop.f32.mrf.mxu1 }
 0x11c   :  { %772 = vmatprep.subr.mxu0 %v508_v3  ;;  %v285_v19 = vadd.f32 %v284_v17, %v130_v14  ;;  %v496_v22 = vmax.f32 %v290_v16, 0.0  ;;  %v399_v44 = vsel %vm395_vm2, %v290_v16, %v397_v40 }
 0x11d   :  { %773 = vmatpush3.msra.mxu0 %v508_v3 }
 0x11e   :  { %774 = vmatprep.subr.mxu0 %v507_v4  ;;  %v495_v23 = vmax.f32 %v285_v19, 0.0  ;;  %v398_v45 = vsel %vm395_vm2, %v285_v19, %v397_v40 }
 0x11f   :  { %775 = vmatpush3.msra.mxu0 %v507_v4 }
 0x120   :  { %776 = vmatprep.subr.mxu0 %v506_v5  ;;  %796 = vmatprep.mubr.f32.mxu0 %v495_v23 }
 0x121   :  { %777 = vmatpush3.msra.mxu0 %v506_v5 }
 0x122   :  { %778 = vmatprep.subr.mxu0 %v505_v6 }
 0x123   :  { %779 = vmatpush3.msra.mxu0 %v505_v6 }
 0x124   :  { %780 = vmatprep.subr.mxu0 %v504_v7 }
 0x125   :  { %781 = vmatpush3.msra.mxu0 %v504_v7 }
 0x126   :  { %782 = vmatprep.subr.mxu0 %v503_v8 }
 0x127   :  { %783 = vmatpush3.msra.mxu0 %v503_v8 }
 0x128   :  { %784 = vmatprep.subr.mxu0 %v502_v9 }
 0x129   :  { %785 = vmatpush3.msra.mxu0 %v502_v9 }
 0x12a   :  { %786 = vmatprep.subr.mxu0 %v501_v10 }
 0x12b   :  { %787 = vmatpush3.msra.mxu0 %v501_v10 }
 0x12c   :  { %788 = vmatprep.subr.mxu0 %v500_v11 }
 0x12d   :  { %789 = vmatpush3.msra.mxu0 %v500_v11 }
 0x12e   :  { %790 = vmatprep.subr.mxu0 %v499_v12 }
 0x12f   :  { %791 = vmatpush3.msra.mxu0 %v499_v12 }
 0x130   :  { %792 = vmatprep.subr.mxu0 %v498_v20 }
 0x131   :  { %793 = vmatpush3.msra.mxu0 %v498_v20 }
 0x132   :  { %794 = vmatprep.subr.mxu0 %v497_v24 }
 0x133   :  { %795 = vmatpush3.msra.mxu0 %v497_v24 }
 0x134   :  { %797 = vmatmul.mubr.f32.vlgmr.msra.gmra.mxu0 %v496_v22 }
 0x1d4   :  { %v728_v30 = vpop.f32.mrf.mxu0 }
 0x1d5   :  { %v390_v31 = vadd.f32 %v728_v30, %v615_v29 }
 0x1d6   :  { %v384_v32 = vpop.f32.mrf.mxu0 }
 0x1d7   :  { %v385_v34 = vadd.f32 %v615_v29, %v384_v32  ;;  %v401_v37 = vmul.f32 %v390_v31, %v214_v35 }
 0x1d9   :  { %v400_v36 = vmul.f32 %v385_v34, %v208_v33 }
 0x1db   :  { %761 = vmatprep.mubr.f32.mxu1 %v400_v36 }
 0x1dc   :  { %762 = vmatmul.mubr.f32.vlgmr.msra.gmra.mxu1 %v401_v37 }
 0x1f4   :  { %v798_v39 = vpop.f32.mrf.mxu0 }
 0x1f5   :  { %v592_v53 = vadd.f32 %v798_v39, %v616_v42 }
 0x1f6   :  { %v586_v43 = vpop.f32.mrf.mxu0 }
 0x1f7   :  { %v587_v49 = vadd.f32 %v616_v42, %v586_v43 }
 0x29c   :  { %v763_v41 = vpop.f32.mrf.mxu1 }
 0x29d   :  { %v490_v47 = vadd.f32 %v763_v41, %v399_v44 }
 0x29e   :  { %v484_v46 = vpop.f32.mrf.mxu1 }
 0x29f   :  { %v485_v48 = vadd.f32 %v484_v46, %v398_v45  ;;  %v494_v52 = vmax.f32 %v490_v47, 0.0 }
 0x2a1   :  { %v493_v51 = vmax.f32 %v485_v48, 0.0  ;;  %v596_v54 = vmul.f32 %v592_v53, %v494_v52 }
 0x2a3   :  { %v595_v50 = vmul.f32 %v587_v49, %v493_v51 }
 0x2a5   :  { %597 = vadd.xlane.f32.xlu0 %v595_v50 }
 0x2a9   :  { %599 = vadd.xlane.f32.xlu0 %v596_v54 }
 0x32e   :  { %v598_v0 = vpop.xlane.xlu0 %597 }
 0x32f   :  { %602 = vst.msk [vmem:[%s1045_s8] sm:$0xff] %vm601_vm3, %v598_v0 }
 0x332   :  { %v600_v55 = vpop.xlane.xlu0 %599 }
 0x333   :  { %603 = vst.msk [vmem:[%s1045_s8 + $0x8] sm:$0xff] %vm601_vm3, %v600_v55 }
 0x334   :  { %608 = vsyncpa [#allocation3], 1 }
 0x335   :  { %609 = vsyncpa [#allocation5], 1 }
 0x336   :  { %610 = vsyncpa [#allocation8], 1 }

</bundles_post_ra>
